<compile_context>
chip_gen: v7x
topology: tpu7x:2x2x1
jax: 0.10.0
libtpu: 0.0.40
codegen_flags: <defaults>
</compile_context>

<pallas_src>
import functools

import jax
import jax.numpy as jnp
from jax.experimental import pallas as pl
from jax.experimental.pallas import tpu as pltpu


def _round_up(x, m):
    return ((x + m - 1) // m) * m


# ----------------------------------------------------------------------------
# Fused kernel: input 1x1 conv -> L dilated residual layers -> output 1x1 conv
# ----------------------------------------------------------------------------
def _refinement_kernel(x_ref, in_w_ref, in_b_ref, wd_ref, bd_ref, w1_ref, b1_ref,
                       out_w_ref, out_b_ref, o_ref, buf_ref,
                       *, dilations, pad, compute_dtype):
    # x_ref:    (1, D, T)           input for one batch element
    # in_w_ref: (F, D)              in_b_ref: (F, 1)
    # wd_ref:   (L, F, 3F)          stacked-K dilated-conv weights (taps folded into K)
    # bd_ref:   (L, F, 1)
    # w1_ref:   (L, F, F)           b1_ref: (L, F, 1)
    # out_w_ref:(K, F)              out_b_ref: (K, 1)
    # o_ref:    (1, K, T)
    # buf_ref:  (3F, T + 2*pad)     compute-dtype scratch:
    #             rows [F:2F]  = zero-padded centre band (current h)
    #             rows [0:F]   = prev tap (h shifted by -d), centre cols only
    #             rows [2F:3F] = next tap (h shifted by +d), centre cols only
    cdt = compute_dtype
    T = x_ref.shape[-1]
    F = in_w_ref.shape[0]

    # Zero the centre-band halo columns once per invocation (the centre region
    # [pad, pad+T) is always rewritten before being read; prev/next band halos
    # are never read).  Unconditional so it is correct under megacore sharding.
    zeros_halo = jnp.zeros((F, pad), dtype=buf_ref.dtype)
    buf_ref[F:2 * F, 0:pad] = zeros_halo
    buf_ref[F:2 * F, pad + T:pad + T + pad] = zeros_halo

    # Input 1x1 conv -> f32 residual stream h of shape (F, T).
    x = x_ref[0].astype(cdt)
    h = jnp.dot(in_w_ref[...], x, preferred_element_type=jnp.float32) + in_b_ref[...]

    # Dilated residual layers (unrolled; dilations are static powers of two).
    for l, d in enumerate(dilations):
        hc = h.astype(cdt)
        # Stage the centre band, then build the +/- d taps as lane-offset
        # copies from it (boundary zeros come from the halo).
        buf_ref[F:2 * F, pad:pad + T] = hc                                   # h[:, t]
        buf_ref[0:F, pad:pad + T] = buf_ref[F:2 * F, pad - d:pad - d + T]    # h[:, t - d]
        buf_ref[2 * F:3 * F, pad:pad + T] = buf_ref[F:2 * F, pad + d:pad + d + T]  # h[:, t + d]

        xk = buf_ref[:, pad:pad + T]                       # (3F, T) stacked-K operand
        y = jnp.dot(wd_ref[l], xk, preferred_element_type=jnp.float32) + bd_ref[l]
        y = jnp.maximum(y, 0.0).astype(cdt)                # ReLU
        y = jnp.dot(w1_ref[l], y, preferred_element_type=jnp.float32) + b1_ref[l]
        # TODO(synk): nn.Dropout is stochastic in train mode; eval-mode identity here.
        h = h + y                                          # residual add in f32

    # Output 1x1 conv.
    o = jnp.dot(out_w_ref[...], h.astype(cdt), preferred_element_type=jnp.float32)
    o_ref[0] = (o + out_b_ref[...]).astype(o_ref.dtype)


# ----------------------------------------------------------------------------
# One-time parameter preprocessing (hoisted out of the forward pass)
# ----------------------------------------------------------------------------
def pack_params(params, compute_dtype=jnp.bfloat16):
    """Stack per-layer weights, fold the 3 dilated-conv taps into a single
    (F, 3F) stacked-K matrix (tap-major K: [prev; centre; next]), reshape
    biases to (F, 1) f32, and cast the matmul operands to the compute dtype
    (bf16 recommended on v5e/v6e/v7x)."""
    cdt = compute_dtype
    F = params["in_w"].shape[0]
    K = params["out_w"].shape[0]
    layers = params["layers"]
    # PyTorch Conv1d weight (Cout, Cin, 3) -> (Cout, 3*Cin) with tap-major K.
    wd = jnp.stack(
        [jnp.transpose(l["wd"], (0, 2, 1)).reshape(F, 3 * F) for l in layers], axis=0)
    w1 = jnp.stack([l["w1"] for l in layers], axis=0)
    bd = jnp.stack([l["bd"].reshape(F, 1) for l in layers], axis=0)
    b1 = jnp.stack([l["b1"].reshape(F, 1) for l in layers], axis=0)
    return {
        "in_w": params["in_w"].astype(cdt),
        "in_b": params["in_b"].reshape(F, 1).astype(jnp.float32),
        "wd": wd.astype(cdt),
        "bd": bd.astype(jnp.float32),
        "w1": w1.astype(cdt),
        "b1": b1.astype(jnp.float32),
        "out_w": params["out_w"].astype(cdt),
        "out_b": params["out_b"].reshape(K, 1).astype(jnp.float32),
        "dilations": tuple(int(l["dilation"]) for l in layers),
        "compute_dtype": cdt,
    }


# ----------------------------------------------------------------------------
# Fused forward pass (single pallas_call)
# ----------------------------------------------------------------------------
def refinement_forward(x, packed):
    N, D, T = x.shape
    F = packed["in_w"].shape[0]
    K = packed["out_w"].shape[0]
    dil = packed["dilations"]
    L = len(dil)
    dmax = max(dil)
    # Halo >= max dilation, rounded to 128 lanes so centre-window accesses stay
    # lane-aligned.
    pad = max(_round_up(dmax, 128), 128)

    kernel = functools.partial(
        _refinement_kernel, dilations=dil, pad=pad,
        compute_dtype=packed["compute_dtype"])

    c2 = lambda n: (0, 0)
    c3 = lambda n: (0, 0, 0)
    return pl.pallas_call(
        kernel,
        out_shape=jax.ShapeDtypeStruct((N, K, T), jnp.float32),
        grid=(N,),
        in_specs=[
            pl.BlockSpec((1, D, T), lambda n: (n, 0, 0)),
            pl.BlockSpec((F, D), c2),
            pl.BlockSpec((F, 1), c2),
            pl.BlockSpec((L, F, 3 * F), c3),
            pl.BlockSpec((L, F, 1), c3),
            pl.BlockSpec((L, F, F), c3),
            pl.BlockSpec((L, F, 1), c3),
            pl.BlockSpec((K, F), c2),
            pl.BlockSpec((K, 1), c2),
        ],
        out_specs=pl.BlockSpec((1, K, T), lambda n: (n, 0, 0)),
        scratch_shapes=[pltpu.VMEM((3 * F, T + 2 * pad), packed["compute_dtype"])],
        compiler_params=pltpu.CompilerParams(
            dimension_semantics=("parallel",),      # batch axis -> megacore / 2 TCs on v7x
            vmem_limit_bytes=32 * 1024 * 1024,      # safe on v5e/v6e/v7x physical VMEM
        ),
    )(x, packed["in_w"], packed["in_b"], packed["wd"], packed["bd"],
      packed["w1"], packed["b1"], packed["out_w"], packed["out_b"])


# ----------------------------------------------------------------------------
# Pure-JAX reference (for correctness check); compute_dtype mirrors the kernel
# ----------------------------------------------------------------------------
def refinement_reference(x, params, compute_dtype=jnp.float32):
    cdt = compute_dtype

    def mm(w, a):  # (O, I) x (N, I, T) -> (N, O, T), f32 accumulation
        return jnp.einsum("oi,nit->not", w.astype(cdt), a.astype(cdt),
                          preferred_element_type=jnp.float32)

    out = mm(params["in_w"], x) + params["in_b"][None, :, None]
    for layer in params["layers"]:
        d = int(layer["dilation"])
        _, _, T = out.shape
        xp = jnp.pad(out, ((0, 0), (0, 0), (d, d)))
        y = sum(mm(layer["wd"][:, :, k], xp[:, :, k * d:k * d + T]) for k in range(3))
        y = jax.nn.relu(y + layer["bd"][None, :, None])
        y = mm(layer["w1"], y) + layer["b1"][None, :, None]
        out = out + y
    return mm(params["out_w"], out) + params["out_b"][None, :, None]


# ----------------------------------------------------------------------------
# Deterministic parameter construction (shapes from Refinement.__init__)
# ----------------------------------------------------------------------------
def make_params(key, num_layers, num_f_maps, dim, num_classes):
    ks = jax.random.split(key, 2 + 4 * num_layers + 2)
    it = iter(ks)

    def u(k, shape, fan_in):
        bound = 1.0 / jnp.sqrt(fan_in)
        return jax.random.uniform(k, shape, jnp.float32, -bound, bound)

    params = {
        "in_w": u(next(it), (num_f_maps, dim), dim),
        "in_b": u(next(it), (num_f_maps,), dim),
        "layers": [],
    }
    for i in range(num_layers):
        params["layers"].append({
            "dilation": 2 ** i,
            "wd": u(next(it), (num_f_maps, num_f_maps, 3), 3 * num_f_maps),
            "bd": u(next(it), (num_f_maps,), 3 * num_f_maps),
            "w1": u(next(it), (num_f_maps, num_f_maps), num_f_maps),
            "b1": u(next(it), (num_f_maps,), num_f_maps),
        })
    params["out_w"] = u(next(it), (num_classes, num_f_maps), num_f_maps)
    params["out_b"] = u(next(it), (num_classes,), num_f_maps)
    return params


if __name__ == "__main__":
    num_layers, num_f_maps, dim, num_classes = 3, 32, 16, 8
    N, T = 2, 128

    key = jax.random.PRNGKey(0)
    pkey, xkey = jax.random.split(key)
    params = make_params(pkey, num_layers, num_f_maps, dim, num_classes)
    x = jax.random.normal(xkey, (N, dim, T), dtype=jnp.float32)  # (N, C, T) like PyTorch

    # f32 compute mode: exact structural check against the f32 reference.
    packed_f32 = pack_params(params, compute_dtype=jnp.float32)
    out_f32 = jax.block_until_ready(refinement_forward(x, packed_f32))
    ref_f32 = refinement_reference(x, params, compute_dtype=jnp.float32)
    assert out_f32.shape == (N, num_classes, T)
    assert jnp.allclose(out_f32, ref_f32, rtol=1e-4, atol=1e-4), "f32 mismatch vs reference"

    # bf16 compute mode (recommended): check vs bf16-operand reference.
    packed_bf16 = pack_params(params, compute_dtype=jnp.bfloat16)
    out_bf16 = jax.block_until_ready(refinement_forward(x, packed_bf16))
    ref_bf16 = refinement_reference(x, params, compute_dtype=jnp.bfloat16)
    assert out_bf16.shape == (N, num_classes, T)
    assert jnp.allclose(out_bf16, ref_bf16, rtol=1e-2, atol=1e-2), "bf16 mismatch vs reference"

    print("KERNEL_OK")
</pallas_src>

<mosaic_0001>
module attributes {stable_mosaic.version = 11 : i64} {
  func.func @_refinement_kernel(%arg0: i32, %arg1: memref<1x16x128xf32, #tpu.memory_space<vmem>>, %arg2: memref<32x16xf32, #tpu.memory_space<vmem>>, %arg3: memref<32x1xf32, #tpu.memory_space<vmem>>, %arg4: memref<3x32x96xf32, #tpu.memory_space<vmem>>, %arg5: memref<3x32x1xf32, #tpu.memory_space<vmem>>, %arg6: memref<3x32x32xf32, #tpu.memory_space<vmem>>, %arg7: memref<3x32x1xf32, #tpu.memory_space<vmem>>, %arg8: memref<8x32xf32, #tpu.memory_space<vmem>>, %arg9: memref<8x1xf32, #tpu.memory_space<vmem>>, %arg10: memref<1x8x128xf32, #tpu.memory_space<vmem>>, %arg11: memref<96x384xf32, #tpu.memory_space<vmem>>) attributes {dimension_semantics = [#tpu.dimension_semantics<parallel>], iteration_bounds = array<i64: 2>, scalar_prefetch = 0 : i64, scratch_operands = 1 : i64, tpu.core_type = #tpu.core_type<tc>, window_params = [{transform_indices = @transform_0, window_bounds = array<i64: 1, 16, 128>}, {pipeline_mode = #tpu.pipeline_mode<synchronous>, transform_indices = @transform_1, window_bounds = array<i64: 32, 16>}, {pipeline_mode = #tpu.pipeline_mode<synchronous>, transform_indices = @transform_2, window_bounds = array<i64: 32, 1>}, {pipeline_mode = #tpu.pipeline_mode<synchronous>, transform_indices = @transform_3, window_bounds = array<i64: 3, 32, 96>}, {pipeline_mode = #tpu.pipeline_mode<synchronous>, transform_indices = @transform_4, window_bounds = array<i64: 3, 32, 1>}, {pipeline_mode = #tpu.pipeline_mode<synchronous>, transform_indices = @transform_5, window_bounds = array<i64: 3, 32, 32>}, {pipeline_mode = #tpu.pipeline_mode<synchronous>, transform_indices = @transform_6, window_bounds = array<i64: 3, 32, 1>}, {pipeline_mode = #tpu.pipeline_mode<synchronous>, transform_indices = @transform_7, window_bounds = array<i64: 8, 32>}, {pipeline_mode = #tpu.pipeline_mode<synchronous>, transform_indices = @transform_8, window_bounds = array<i64: 8, 1>}, {transform_indices = @transform_9, window_bounds = array<i64: 1, 8, 128>}]} {
    %cst = arith.constant 0.000000e+00 : f32
    %0 = vector.broadcast %cst : f32 to vector<32x128xf32>
    %c32 = arith.constant 32 : index
    %c0 = arith.constant 0 : index
    %1 = vector.load %arg11[%c32, %c0] : memref<96x384xf32, #tpu.memory_space<vmem>>, vector<32x128xf32>
    tpu.vector_store %arg11[%c32, %c0], %0 {strides = array<i32>} : memref<96x384xf32, #tpu.memory_space<vmem>>, vector<32x128xf32>,
    %c32_0 = arith.constant 32 : index
    %c256 = arith.constant 256 : index
    %2 = vector.load %arg11[%c32_0, %c256] : memref<96x384xf32, #tpu.memory_space<vmem>>, vector<32x128xf32>
    tpu.vector_store %arg11[%c32_0, %c256], %0 {strides = array<i32>} : memref<96x384xf32, #tpu.memory_space<vmem>>, vector<32x128xf32>,
    %c0_1 = arith.constant 0 : index
    %c0_2 = arith.constant 0 : index
    %c0_3 = arith.constant 0 : index
    %3 = vector.load %arg1[%c0_1, %c0_2, %c0_3] : memref<1x16x128xf32, #tpu.memory_space<vmem>>, vector<1x16x128xf32>
    %4 = vector.shape_cast %3 : vector<1x16x128xf32> to vector<16x128xf32>
    %c0_4 = arith.constant 0 : index
    %c0_5 = arith.constant 0 : index
    %5 = vector.load %arg2[%c0_4, %c0_5] : memref<32x16xf32, #tpu.memory_space<vmem>>, vector<32x16xf32>
    %cst_6 = arith.constant dense<0.000000e+00> : vector<32x128xf32>
    %6 = tpu.matmul %5, %4, %cst_6 {dimension_numbers = #tpu.dot_dimension_numbers<[1], [0], [0], [1], [0, 0, 1, 1], [], []>} : vector<32x16xf32>, vector<16x128xf32>, vector<32x128xf32> -> vector<32x128xf32>
    %c0_7 = arith.constant 0 : index
    %c0_8 = arith.constant 0 : index
    %7 = vector.load %arg3[%c0_7, %c0_8] : memref<32x1xf32, #tpu.memory_space<vmem>>, vector<32x1xf32>
    %8 = vector.broadcast %7 : vector<32x1xf32> to vector<32x128xf32>
    %9 = arith.addf %6, %8 : vector<32x128xf32>
    %c32_9 = arith.constant 32 : index
    %c128 = arith.constant 128 : index
    %10 = vector.load %arg11[%c32_9, %c128] : memref<96x384xf32, #tpu.memory_space<vmem>>, vector<32x128xf32>
    tpu.vector_store %arg11[%c32_9, %c128], %9 {strides = array<i32>} : memref<96x384xf32, #tpu.memory_space<vmem>>, vector<32x128xf32>,
    %c32_10 = arith.constant 32 : index
    %c127 = arith.constant 127 : index
    %11 = vector.load %arg11[%c32_10, %c127] : memref<96x384xf32, #tpu.memory_space<vmem>>, vector<32x128xf32>
    %c0_11 = arith.constant 0 : index
    %c128_12 = arith.constant 128 : index
    %12 = vector.load %arg11[%c0_11, %c128_12] : memref<96x384xf32, #tpu.memory_space<vmem>>, vector<32x128xf32>
    tpu.vector_store %arg11[%c0_11, %c128_12], %11 {strides = array<i32>} : memref<96x384xf32, #tpu.memory_space<vmem>>, vector<32x128xf32>,
    %c32_13 = arith.constant 32 : index
    %c129 = arith.constant 129 : index
    %13 = vector.load %arg11[%c32_13, %c129] : memref<96x384xf32, #tpu.memory_space<vmem>>, vector<32x128xf32>
    %c64 = arith.constant 64 : index
    %c128_14 = arith.constant 128 : index
    %14 = vector.load %arg11[%c64, %c128_14] : memref<96x384xf32, #tpu.memory_space<vmem>>, vector<32x128xf32>
    tpu.vector_store %arg11[%c64, %c128_14], %13 {strides = array<i32>} : memref<96x384xf32, #tpu.memory_space<vmem>>, vector<32x128xf32>,
    %c0_15 = arith.constant 0 : index
    %c128_16 = arith.constant 128 : index
    %15 = vector.load %arg11[%c0_15, %c128_16] : memref<96x384xf32, #tpu.memory_space<vmem>>, vector<96x128xf32>
    %c0_17 = arith.constant 0 : index
    %c0_18 = arith.constant 0 : index
    %c0_19 = arith.constant 0 : index
    %16 = vector.load %arg4[%c0_17, %c0_18, %c0_19] : memref<3x32x96xf32, #tpu.memory_space<vmem>>, vector<1x32x96xf32>
    %17 = vector.shape_cast %16 : vector<1x32x96xf32> to vector<32x96xf32>
    %cst_20 = arith.constant dense<0.000000e+00> : vector<32x128xf32>
    %18 = tpu.matmul %17, %15, %cst_20 {dimension_numbers = #tpu.dot_dimension_numbers<[1], [0], [0], [1], [0, 0, 1, 1], [], []>} : vector<32x96xf32>, vector<96x128xf32>, vector<32x128xf32> -> vector<32x128xf32>
    %c0_21 = arith.constant 0 : index
    %c0_22 = arith.constant 0 : index
    %c0_23 = arith.constant 0 : index
    %19 = vector.load %arg5[%c0_21, %c0_22, %c0_23] : memref<3x32x1xf32, #tpu.memory_space<vmem>>, vector<1x32x1xf32>
    %20 = vector.shape_cast %19 : vector<1x32x1xf32> to vector<32x1xf32>
    %21 = vector.broadcast %20 : vector<32x1xf32> to vector<32x128xf32>
    %22 = arith.addf %18, %21 : vector<32x128xf32>
    %cst_24 = arith.constant 0.000000e+00 : f32
    %23 = vector.broadcast %cst_24 : f32 to vector<32x128xf32>
    %24 = arith.maximumf %22, %23 : vector<32x128xf32>
    %c0_25 = arith.constant 0 : index
    %c0_26 = arith.constant 0 : index
    %c0_27 = arith.constant 0 : index
    %25 = vector.load %arg6[%c0_25, %c0_26, %c0_27] : memref<3x32x32xf32, #tpu.memory_space<vmem>>, vector<1x32x32xf32>
    %26 = vector.shape_cast %25 : vector<1x32x32xf32> to vector<32x32xf32>
    %cst_28 = arith.constant dense<0.000000e+00> : vector<32x128xf32>
    %27 = tpu.matmul %26, %24, %cst_28 {dimension_numbers = #tpu.dot_dimension_numbers<[1], [0], [0], [1], [0, 0, 1, 1], [], []>} : vector<32x32xf32>, vector<32x128xf32>, vector<32x128xf32> -> vector<32x128xf32>
    %c0_29 = arith.constant 0 : index
    %c0_30 = arith.constant 0 : index
    %c0_31 = arith.constant 0 : index
    %28 = vector.load %arg7[%c0_29, %c0_30, %c0_31] : memref<3x32x1xf32, #tpu.memory_space<vmem>>, vector<1x32x1xf32>
    %29 = vector.shape_cast %28 : vector<1x32x1xf32> to vector<32x1xf32>
    %30 = vector.broadcast %29 : vector<32x1xf32> to vector<32x128xf32>
    %31 = arith.addf %27, %30 : vector<32x128xf32>
    %32 = arith.addf %9, %31 : vector<32x128xf32>
    %c32_32 = arith.constant 32 : index
    %c128_33 = arith.constant 128 : index
    %33 = vector.load %arg11[%c32_32, %c128_33] : memref<96x384xf32, #tpu.memory_space<vmem>>, vector<32x128xf32>
    tpu.vector_store %arg11[%c32_32, %c128_33], %32 {strides = array<i32>} : memref<96x384xf32, #tpu.memory_space<vmem>>, vector<32x128xf32>,
    %c32_34 = arith.constant 32 : index
    %c126 = arith.constant 126 : index
    %34 = vector.load %arg11[%c32_34, %c126] : memref<96x384xf32, #tpu.memory_space<vmem>>, vector<32x128xf32>
    %c0_35 = arith.constant 0 : index
    %c128_36 = arith.constant 128 : index
    %35 = vector.load %arg11[%c0_35, %c128_36] : memref<96x384xf32, #tpu.memory_space<vmem>>, vector<32x128xf32>
    tpu.vector_store %arg11[%c0_35, %c128_36], %34 {strides = array<i32>} : memref<96x384xf32, #tpu.memory_space<vmem>>, vector<32x128xf32>,
    %c32_37 = arith.constant 32 : index
    %c130 = arith.constant 130 : index
    %36 = vector.load %arg11[%c32_37, %c130] : memref<96x384xf32, #tpu.memory_space<vmem>>, vector<32x128xf32>
    %c64_38 = arith.constant 64 : index
    %c128_39 = arith.constant 128 : index
    %37 = vector.load %arg11[%c64_38, %c128_39] : memref<96x384xf32, #tpu.memory_space<vmem>>, vector<32x128xf32>
    tpu.vector_store %arg11[%c64_38, %c128_39], %36 {strides = array<i32>} : memref<96x384xf32, #tpu.memory_space<vmem>>, vector<32x128xf32>,
    %c0_40 = arith.constant 0 : index
    %c128_41 = arith.constant 128 : index
    %38 = vector.load %arg11[%c0_40, %c128_41] : memref<96x384xf32, #tpu.memory_space<vmem>>, vector<96x128xf32>
    %c1 = arith.constant 1 : index
    %c0_42 = arith.constant 0 : index
    %c0_43 = arith.constant 0 : index
    %39 = vector.load %arg4[%c1, %c0_42, %c0_43] : memref<3x32x96xf32, #tpu.memory_space<vmem>>, vector<1x32x96xf32>
    %40 = vector.shape_cast %39 : vector<1x32x96xf32> to vector<32x96xf32>
    %cst_44 = arith.constant dense<0.000000e+00> : vector<32x128xf32>
    %41 = tpu.matmul %40, %38, %cst_44 {dimension_numbers = #tpu.dot_dimension_numbers<[1], [0], [0], [1], [0, 0, 1, 1], [], []>} : vector<32x96xf32>, vector<96x128xf32>, vector<32x128xf32> -> vector<32x128xf32>
    %c1_45 = arith.constant 1 : index
    %c0_46 = arith.constant 0 : index
    %c0_47 = arith.constant 0 : index
    %42 = vector.load %arg5[%c1_45, %c0_46, %c0_47] : memref<3x32x1xf32, #tpu.memory_space<vmem>>, vector<1x32x1xf32>
    %43 = vector.shape_cast %42 : vector<1x32x1xf32> to vector<32x1xf32>
    %44 = vector.broadcast %43 : vector<32x1xf32> to vector<32x128xf32>
    %45 = arith.addf %41, %44 : vector<32x128xf32>
    %cst_48 = arith.constant 0.000000e+00 : f32
    %46 = vector.broadcast %cst_48 : f32 to vector<32x128xf32>
    %47 = arith.maximumf %45, %46 : vector<32x128xf32>
    %c1_49 = arith.constant 1 : index
    %c0_50 = arith.constant 0 : index
    %c0_51 = arith.constant 0 : index
    %48 = vector.load %arg6[%c1_49, %c0_50, %c0_51] : memref<3x32x32xf32, #tpu.memory_space<vmem>>, vector<1x32x32xf32>
    %49 = vector.shape_cast %48 : vector<1x32x32xf32> to vector<32x32xf32>
    %cst_52 = arith.constant dense<0.000000e+00> : vector<32x128xf32>
    %50 = tpu.matmul %49, %47, %cst_52 {dimension_numbers = #tpu.dot_dimension_numbers<[1], [0], [0], [1], [0, 0, 1, 1], [], []>} : vector<32x32xf32>, vector<32x128xf32>, vector<32x128xf32> -> vector<32x128xf32>
    %c1_53 = arith.constant 1 : index
    %c0_54 = arith.constant 0 : index
    %c0_55 = arith.constant 0 : index
    %51 = vector.load %arg7[%c1_53, %c0_54, %c0_55] : memref<3x32x1xf32, #tpu.memory_space<vmem>>, vector<1x32x1xf32>
    %52 = vector.shape_cast %51 : vector<1x32x1xf32> to vector<32x1xf32>
    %53 = vector.broadcast %52 : vector<32x1xf32> to vector<32x128xf32>
    %54 = arith.addf %50, %53 : vector<32x128xf32>
    %55 = arith.addf %32, %54 : vector<32x128xf32>
    %c32_56 = arith.constant 32 : index
    %c128_57 = arith.constant 128 : index
    %56 = vector.load %arg11[%c32_56, %c128_57] : memref<96x384xf32, #tpu.memory_space<vmem>>, vector<32x128xf32>
    tpu.vector_store %arg11[%c32_56, %c128_57], %55 {strides = array<i32>} : memref<96x384xf32, #tpu.memory_space<vmem>>, vector<32x128xf32>,
    %c32_58 = arith.constant 32 : index
    %c124 = arith.constant 124 : index
    %57 = vector.load %arg11[%c32_58, %c124] : memref<96x384xf32, #tpu.memory_space<vmem>>, vector<32x128xf32>
    %c0_59 = arith.constant 0 : index
    %c128_60 = arith.constant 128 : index
    %58 = vector.load %arg11[%c0_59, %c128_60] : memref<96x384xf32, #tpu.memory_space<vmem>>, vector<32x128xf32>
    tpu.vector_store %arg11[%c0_59, %c128_60], %57 {strides = array<i32>} : memref<96x384xf32, #tpu.memory_space<vmem>>, vector<32x128xf32>,
    %c32_61 = arith.constant 32 : index
    %c132 = arith.constant 132 : index
    %59 = vector.load %arg11[%c32_61, %c132] : memref<96x384xf32, #tpu.memory_space<vmem>>, vector<32x128xf32>
    %c64_62 = arith.constant 64 : index
    %c128_63 = arith.constant 128 : index
    %60 = vector.load %arg11[%c64_62, %c128_63] : memref<96x384xf32, #tpu.memory_space<vmem>>, vector<32x128xf32>
    tpu.vector_store %arg11[%c64_62, %c128_63], %59 {strides = array<i32>} : memref<96x384xf32, #tpu.memory_space<vmem>>, vector<32x128xf32>,
    %c0_64 = arith.constant 0 : index
    %c128_65 = arith.constant 128 : index
    %61 = vector.load %arg11[%c0_64, %c128_65] : memref<96x384xf32, #tpu.memory_space<vmem>>, vector<96x128xf32>
    %c2 = arith.constant 2 : index
    %c0_66 = arith.constant 0 : index
    %c0_67 = arith.constant 0 : index
    %62 = vector.load %arg4[%c2, %c0_66, %c0_67] : memref<3x32x96xf32, #tpu.memory_space<vmem>>, vector<1x32x96xf32>
    %63 = vector.shape_cast %62 : vector<1x32x96xf32> to vector<32x96xf32>
    %cst_68 = arith.constant dense<0.000000e+00> : vector<32x128xf32>
    %64 = tpu.matmul %63, %61, %cst_68 {dimension_numbers = #tpu.dot_dimension_numbers<[1], [0], [0], [1], [0, 0, 1, 1], [], []>} : vector<32x96xf32>, vector<96x128xf32>, vector<32x128xf32> -> vector<32x128xf32>
    %c2_69 = arith.constant 2 : index
    %c0_70 = arith.constant 0 : index
    %c0_71 = arith.constant 0 : index
    %65 = vector.load %arg5[%c2_69, %c0_70, %c0_71] : memref<3x32x1xf32, #tpu.memory_space<vmem>>, vector<1x32x1xf32>
    %66 = vector.shape_cast %65 : vector<1x32x1xf32> to vector<32x1xf32>
    %67 = vector.broadcast %66 : vector<32x1xf32> to vector<32x128xf32>
    %68 = arith.addf %64, %67 : vector<32x128xf32>
    %cst_72 = arith.constant 0.000000e+00 : f32
    %69 = vector.broadcast %cst_72 : f32 to vector<32x128xf32>
    %70 = arith.maximumf %68, %69 : vector<32x128xf32>
    %c2_73 = arith.constant 2 : index
    %c0_74 = arith.constant 0 : index
    %c0_75 = arith.constant 0 : index
    %71 = vector.load %arg6[%c2_73, %c0_74, %c0_75] : memref<3x32x32xf32, #tpu.memory_space<vmem>>, vector<1x32x32xf32>
    %72 = vector.shape_cast %71 : vector<1x32x32xf32> to vector<32x32xf32>
    %cst_76 = arith.constant dense<0.000000e+00> : vector<32x128xf32>
    %73 = tpu.matmul %72, %70, %cst_76 {dimension_numbers = #tpu.dot_dimension_numbers<[1], [0], [0], [1], [0, 0, 1, 1], [], []>} : vector<32x32xf32>, vector<32x128xf32>, vector<32x128xf32> -> vector<32x128xf32>
    %c2_77 = arith.constant 2 : index
    %c0_78 = arith.constant 0 : index
    %c0_79 = arith.constant 0 : index
    %74 = vector.load %arg7[%c2_77, %c0_78, %c0_79] : memref<3x32x1xf32, #tpu.memory_space<vmem>>, vector<1x32x1xf32>
    %75 = vector.shape_cast %74 : vector<1x32x1xf32> to vector<32x1xf32>
    %76 = vector.broadcast %75 : vector<32x1xf32> to vector<32x128xf32>
    %77 = arith.addf %73, %76 : vector<32x128xf32>
    %78 = arith.addf %55, %77 : vector<32x128xf32>
    %c0_80 = arith.constant 0 : index
    %c0_81 = arith.constant 0 : index
    %79 = vector.load %arg8[%c0_80, %c0_81] : memref<8x32xf32, #tpu.memory_space<vmem>>, vector<8x32xf32>
    %cst_82 = arith.constant dense<0.000000e+00> : vector<8x128xf32>
    %80 = tpu.matmul %79, %78, %cst_82 {dimension_numbers = #tpu.dot_dimension_numbers<[1], [0], [0], [1], [0, 0, 1, 1], [], []>} : vector<8x32xf32>, vector<32x128xf32>, vector<8x128xf32> -> vector<8x128xf32>
    %c0_83 = arith.constant 0 : index
    %c0_84 = arith.constant 0 : index
    %81 = vector.load %arg9[%c0_83, %c0_84] : memref<8x1xf32, #tpu.memory_space<vmem>>, vector<8x1xf32>
    %82 = vector.broadcast %81 : vector<8x1xf32> to vector<8x128xf32>
    %83 = arith.addf %80, %82 : vector<8x128xf32>
    %c0_85 = arith.constant 0 : index
    %c0_86 = arith.constant 0 : index
    %c0_87 = arith.constant 0 : index
    %84 = vector.load %arg10[%c0_85, %c0_86, %c0_87] : memref<1x8x128xf32, #tpu.memory_space<vmem>>, vector<1x8x128xf32>
    %85 = vector.shape_cast %84 : vector<1x8x128xf32> to vector<8x128xf32>
    %86 = vector.shape_cast %83 : vector<8x128xf32> to vector<1x8x128xf32>
    tpu.vector_store %arg10[%c0_85, %c0_86, %c0_87], %86 {strides = array<i32>} : memref<1x8x128xf32, #tpu.memory_space<vmem>>, vector<1x8x128xf32>,
    return
  }
  func.func @transform_0(%arg0: i32) -> (i32, i32, i32) {
    %c0_i32 = arith.constant 0 : i32
    %c0_i32_0 = arith.constant 0 : i32
    %c0_i32_1 = arith.constant 0 : i32
    return %arg0, %c0_i32, %c0_i32_0 : i32, i32, i32
  }
  func.func @transform_1(%arg0: i32) -> (i32, i32) {
    %c0_i32 = arith.constant 0 : i32
    %c0_i32_0 = arith.constant 0 : i32
    %c0_i32_1 = arith.constant 0 : i32
    return %c0_i32, %c0_i32_0 : i32, i32
  }
  func.func @transform_2(%arg0: i32) -> (i32, i32) {
    %c0_i32 = arith.constant 0 : i32
    %c0_i32_0 = arith.constant 0 : i32
    %c0_i32_1 = arith.constant 0 : i32
    return %c0_i32, %c0_i32_0 : i32, i32
  }
  func.func @transform_3(%arg0: i32) -> (i32, i32, i32) {
    %c0_i32 = arith.constant 0 : i32
    %c0_i32_0 = arith.constant 0 : i32
    %c0_i32_1 = arith.constant 0 : i32
    %c0_i32_2 = arith.constant 0 : i32
    return %c0_i32, %c0_i32_0, %c0_i32_1 : i32, i32, i32
  }
  func.func @transform_4(%arg0: i32) -> (i32, i32, i32) {
    %c0_i32 = arith.constant 0 : i32
    %c0_i32_0 = arith.constant 0 : i32
    %c0_i32_1 = arith.constant 0 : i32
    %c0_i32_2 = arith.constant 0 : i32
    return %c0_i32, %c0_i32_0, %c0_i32_1 : i32, i32, i32
  }
  func.func @transform_5(%arg0: i32) -> (i32, i32, i32) {
    %c0_i32 = arith.constant 0 : i32
    %c0_i32_0 = arith.constant 0 : i32
    %c0_i32_1 = arith.constant 0 : i32
    %c0_i32_2 = arith.constant 0 : i32
    return %c0_i32, %c0_i32_0, %c0_i32_1 : i32, i32, i32
  }
  func.func @transform_6(%arg0: i32) -> (i32, i32, i32) {
    %c0_i32 = arith.constant 0 : i32
    %c0_i32_0 = arith.constant 0 : i32
    %c0_i32_1 = arith.constant 0 : i32
    %c0_i32_2 = arith.constant 0 : i32
    return %c0_i32, %c0_i32_0, %c0_i32_1 : i32, i32, i32
  }
  func.func @transform_7(%arg0: i32) -> (i32, i32) {
    %c0_i32 = arith.constant 0 : i32
    %c0_i32_0 = arith.constant 0 : i32
    %c0_i32_1 = arith.constant 0 : i32
    return %c0_i32, %c0_i32_0 : i32, i32
  }
  func.func @transform_8(%arg0: i32) -> (i32, i32) {
    %c0_i32 = arith.constant 0 : i32
    %c0_i32_0 = arith.constant 0 : i32
    %c0_i32_1 = arith.constant 0 : i32
    return %c0_i32, %c0_i32_0 : i32, i32
  }
  func.func @transform_9(%arg0: i32) -> (i32, i32, i32) {
    %c0_i32 = arith.constant 0 : i32
    %c0_i32_0 = arith.constant 0 : i32
    %c0_i32_1 = arith.constant 0 : i32
    return %arg0, %c0_i32, %c0_i32_0 : i32, i32, i32
  }
}

</mosaic_0001>

<bundles_post_ra>
// kernel: tpu_custom_call.1
= control target key start
LH: loop header
LB: loop body
LE: loop exit
PB: predicated region body
PF: predicated region fallthrough
CT: control target
= control target key end

     0   :  { %14 = vsyncpa [#allocation4], 0  ;;  %s2858_s0 = inlined_call_operand.vmem [shape: f32[2,16,128], index: 0, kind: input, shape index: {}]   ;;  %s2859_s1 = inlined_call_operand.vmem [shape: f32[32,16], index: 1, kind: input, shape index: {}]   ;;  %s2860_s2 = inlined_call_operand.vmem [shape: f32[32,1], index: 2, kind: input, shape index: {}]   ;;  %s2861_s3 = inlined_call_operand.vmem [shape: f32[3,32,96], index: 3, kind: input, shape index: {}]   ;;  %s2862_s4 = inlined_call_operand.vmem [shape: f32[3,32,1], index: 4, kind: input, shape index: {}]   ;;  %s2863_s5 = inlined_call_operand.vmem [shape: f32[3,32,32], index: 5, kind: input, shape index: {}]   ;;  %s2864_s6 = inlined_call_operand.vmem [shape: f32[3,32,1], index: 6, kind: input, shape index: {}]   ;;  %s2865_s7 = inlined_call_operand.vmem [shape: f32[8,32], index: 7, kind: input, shape index: {}]   ;;  %s2866_s8 = inlined_call_operand.vmem [shape: f32[8,1], index: 8, kind: input, shape index: {}]   ;;  %s2867_s9 = inlined_call_operand.hbm [shape: f32[2,8,128], index: 9, kind: output, shape index: {}]  }
   0x1   :  { %16 = vsyncpa [#allocation4 + $0x1], 0  ;;  %s2434_s30 = smov 0   ;;  %s2436_s10 = smov 0  }
   0x2   :  { %s2438_s11 = smov 0   ;;  %s2440_s12 = smov 0  }
   0x3 LB: > { %s2455_s13 = sadd.s32 4294967295, %s2371_s12   ;;  %s1723_s14 = sadd.s32 4294967294, %s2371_s12   ;;  %s2371_s12 = sphi %s2440_s12, %s2873_s12   ;;  %s2367_s11 = sphi %s2438_s11, %s2872_s11   ;;  %s2363_s10 = sphi %s2436_s10, %s2871_s10   ;;  %s2359_s30 = sphi %s2434_s30, %s2870_s30  }
   0x4   : > { %s2459_s15 = sadd.s32 1, %s2371_s12   ;;  %s223_s16 = sadd.s32 1, %s2367_s11 }
   0x5   : > { %s220_s17 = ssub.s32 %s2371_s12, %s2459_s15  ;;  %p233_p0 = scmp.ne.s32.totalorder %s2367_s11, %s2363_s10 }
   0x6   : > { %p221_p1 = scmp.eq.s32.totalorder %s220_s17, 0  ;;  %p234_p2 = scmp.eq.s32.totalorder %s2455_s13, 1 }
   0x7   : > { %p239_p3 = scmp.ne.s32.totalorder %s2363_s10, %s2359_s30  ;;  %p240_p4 = scmp.eq.s32.totalorder %s1723_s14, 1 }
   0x8   : > { %s2470_s18 = scalar_select %p221_p1, %s2367_s11, %s223_s16  }
   0x9   : > { %p2472_p5 = por %p234_p2, %p233_p0  ;;  %p2476_p6 = por %p240_p4, %p239_p3 }
   0xa   : > { %p1726_p7 = scmp.ge.s32.totalorder %s2371_s12, 1  ;;  %p290_p8 = scmp.lt.s32.totalorder %s2371_s12, 3 }
   0xc   : > { %p291_p9 = pnand %p1726_p7, %p290_p8 }
   0xd   : > { %p326_p10 = scmp.lt.s32.totalorder (!%p291_p9), %s2455_s13, 1  ;;  %v341_v0 = vld [vmem:[%s2859_s1] sm:$0xff] (!%p291_p9)  ;;  %vm369_vm0 = vcmask (!%p291_p9), 130048   ;;  %v2373_v1 = vmov (!%p291_p9), 0   ;;  %v347_v3 = vld [vmem:[%s2860_s2 + $0x10] sm:$0xff] (!%p291_p9)  ;;  %v346_v4 = vld [vmem:[%s2860_s2 + $0x8] sm:$0xff] (!%p291_p9) }
   0xe   : > { %294 = sbr.rel (%p291_p9) target bundleno = 2254 (0x8ce), region = 56  ;;  %1883 = vmatprep.mubr.msk.f32.mxu0 (!%p291_p9), %vm369_vm0, %v341_v0  ;;  %2187 = vset.pattern.permute.xlu0 (!%p291_p9), %v2373_v1  ;;  %v345_v2 = vld [vmem:[%s2860_s2] sm:$0xff] (!%p291_p9)  ;;  %v348_v5 = vld [vmem:[%s2860_s2 + $0x18] sm:$0xff] (!%p291_p9)  ;;  %v342_v9 = vld [vmem:[%s2859_s1 + $0x8] sm:$0xff] (!%p291_p9)  ;;  %v2374_v19 = vmov (!%p291_p9), 0.0   ;;  %s2376_s16 = smov (!%p291_p9), 127  }
   0xf   : > { %351 = vperm.xlu0 (!%p291_p9), %2187, %v345_v2   ;;  %2188 = vset.pattern.permute.xlu1 (!%p291_p9), %v2373_v1  ;;  %v343_v10 = vld [vmem:[%s2859_s1 + $0x10] sm:$0xff] (!%p291_p9)  ;;  %v344_v11 = vld [vmem:[%s2859_s1 + $0x18] sm:$0xff] (!%p291_p9)  ;;  %v578_v33 = vld [vmem:[%s2862_s4 + $0x8] sm:$0xff] (!%p291_p9)  ;;  %vm601_vm1 = vcmask (!%p291_p9), 785408   ;;  %vm503_vm2 = vcmask (!%p291_p9), 7168   ;;  %vm548_vm3 = vcmask (!%p291_p9), 1039360  }
  0x10   : > { %361 = vperm.xlu1 (!%p291_p9), %2188, %v347_v3   ;;  %v577_v34 = vld [vmem:[%s2862_s4] sm:$0xff] (!%p291_p9)  ;;  %v580_v36 = vld [vmem:[%s2862_s4 + $0x18] sm:$0xff] (!%p291_p9)  ;;  %v579_v37 = vld [vmem:[%s2862_s4 + $0x10] sm:$0xff] (!%p291_p9)  ;;  %vm731_vm4 = vcmask (!%p291_p9), 261120   ;;  %s2377_s28 = smov (!%p291_p9), 2   ;;  %s2378_s29 = smov (!%p291_p9), 126  }
  0x11   : > { %v573_v35 = vld [vmem:[%s2861_s3] sm:$0xff] (!%p291_p9)  ;;  %v708_v38 = vld [vmem:[%s2864_s6 + $0x8] sm:$0xff] (!%p291_p9)  ;;  %v710_v40 = vld [vmem:[%s2864_s6 + $0x18] sm:$0xff] (!%p291_p9)  ;;  %vm869_vm5 = vcmask (!%p291_p9), 15360   ;;  %vm914_vm6 = vcmask (!%p291_p9), 1031168   ;;  %s2379_s26 = smov (!%p291_p9), 4  }
  0x12   : > { %1913 = vmatprep.mubr.msk.f32.mxu1 (!%p291_p9), %vm601_vm1, %v573_v35  ;;  %v707_v39 = vld [vmem:[%s2864_s6] sm:$0xff] (!%p291_p9)  ;;  %v709_v41 = vld [vmem:[%s2864_s6 + $0x10] sm:$0xff] (!%p291_p9)  ;;  %vm1237_vm7 = vcmask (!%p291_p9), 31744   ;;  %vm1282_vm8 = vcmask (!%p291_p9), 1014784   ;;  %vm2382_vm9 = vmmov (!%p291_p9), 0  }
  0x13   : > { %356 = vperm.xlu0 (!%p291_p9), %2187, %v346_v4  }
  0x14   : > { %366 = vperm.xlu1 (!%p291_p9), %2188, %v348_v5  }
  0x15   : > { %s327_s27 = scalar_select %p326_p10, %s2455_s13, 1 }
  0x17   : > { %s1795_s14 = sshll.u32 %s327_s27, 4  ;;  %s2380_s27 = smov 124  }
  0x18   : > { %s330_s23 = scalar_lea.vmem %s2858_s0, %s1795_s14  ;;  %s2375_s14 = smov 1  }
  0x19   : > { %v339_v6 = vld [vmem:[%s330_s23] sm:$0xff]  ;;  %v340_v7 = vld [vmem:[%s330_s23 + $0x8] sm:$0xff] }
  0x1a   : > { %v2032_v8 = vpack.c.bf16 %v340_v7, %v339_v6 }
  0x1c   : > { %2033 = vmatprep.subr.bf16.mxu0 %v2032_v8 }
  0x1d   : > { %2035 = vmatpush3.bf16.msra.mxu0 %v2032_v8 }
  0x20   : > { %1884 = vmatmul.mubr.msk.f32.vlgmr.msra.gmra.mrb[0].mxu0 %vm369_vm0, %v342_v9 }
  0x21   : > { %1886 = vmatprep.mubr.msk.f32.mxu0 %vm369_vm0, %v343_v10 }
  0x24   : > { %1887 = vmatmul.mubr.msk.f32.gmra.mrb[2].mxu0 %vm369_vm0, %v344_v11 }
  0x8e   : > { %v352_v12 = vpop.permute.xlu0 %351 }
  0x8f   : > { %v362_v13 = vpop.permute.xlu1 %361 }
  0x92   : > { %v357_v14 = vpop.permute.xlu0 %356 }
  0x93   : > { %v367_v21 = vpop.permute.xlu1 %366 }
  0xf3   : > { %v1885_v15 = vpop.f32.mrb[0].mxu0 }
  0xf4   : > { %v2515_v16 = vadd.f32 %v1885_v15, %v357_v14  ;;  %v448_v17 = vpop.f32.mrb[1].mxu0 }
  0xf5   : > { %v2517_v18 = vadd.f32 %v448_v17, %v352_v12  ;;  %v574_v17 = vld [vmem:[%s2861_s3 + $0x8] sm:$0xff] }
  0xf6   : > { %v2189_v20 = vpack.i.bf16 %v2515_v16, %v2374_v19  ;;  %v2214_v29 = vpack.i.bf16 %v2374_v19, %v2515_v16 }
  0xf7   : > { %v1888_v22 = vpop.f32.mrb[2].mxu0  ;;  %v2194_v23 = vpack.i.bf16 %v2517_v18, %v2374_v19  ;;  %v2209_v30 = vpack.i.bf16 %v2374_v19, %v2517_v18  ;;  %v2044_v62 = vpack.c.bf16 %v2515_v16, %v2517_v18 }
  0xf8   : > { %v2523_v24 = vadd.f32 %v1888_v22, %v367_v21  ;;  %2190 = vrot.lane.b32.xlu1 %v2189_v20, %s2375_s14  ;;  %v458_v25 = vpop.f32.mrb[3].mxu0  ;;  %v575_v20 = vld [vmem:[%s2861_s3 + $0x10] sm:$0xff]  ;;  %v576_v21 = vld [vmem:[%s2861_s3 + $0x18] sm:$0xff]  ;;  %v703_v22 = vld [vmem:[%s2863_s5] sm:$0xff] }
  0xf9   : > { %v2525_v26 = vadd.f32 %v458_v25, %v362_v13  ;;  %2195 = vrot.lane.b32.xlu0 %v2194_v23, %s2375_s14  ;;  %1927 = vmatprep.mubr.msk.f32.mxu0 %vm731_vm4, %v703_v22 }
  0xfa   : > { %v2204_v27 = vpack.i.bf16 %v2523_v24, %v2374_v19  ;;  %v2224_v31 = vpack.i.bf16 %v2374_v19, %v2523_v24 }
  0xfb   : > { %v2199_v28 = vpack.i.bf16 %v2525_v26, %v2374_v19  ;;  %v2219_v32 = vpack.i.bf16 %v2374_v19, %v2525_v26  ;;  %v2048_v5 = vpack.c.bf16 %v2523_v24, %v2525_v26 }
  0xfc   : > { %2205 = vrot.lane.b32.xlu1 %v2204_v27, %s2375_s14 }
  0xfd   : > { %2200 = vrot.lane.b32.xlu0 %v2199_v28, %s2375_s14  ;;  %s1792_s14 = sshll.u32 %s2455_s13, 7  ;;  %s2383_s13 = smov [#allocation3]  }
  0xfe   : > { %s2816_s23 = scalar_lea.hbm %s2867_s9, %s1792_s14 }
 0x100   : > { %2215 = vrot.lane.b32.xlu1 %v2214_v29, %s2376_s16 }
 0x101   : > { %2210 = vrot.lane.b32.xlu0 %v2209_v30, %s2376_s16 }
 0x104   : > { %2225 = vrot.lane.b32.xlu1 %v2224_v31, %s2376_s16 }
 0x105   : > { %2220 = vrot.lane.b32.xlu0 %v2219_v32, %s2376_s16 }
 0x108   : > { %588 = vperm.xlu1 %2188, %v578_v33  }
 0x109   : > { %583 = vperm.xlu0 %2187, %v577_v34  }
 0x10c   : > { %598 = vperm.xlu1 %2188, %v580_v36  }
 0x10d   : > { %593 = vperm.xlu0 %2187, %v579_v37  }
 0x110   : > { %718 = vperm.xlu1 %2188, %v708_v38  }
 0x111   : > { %713 = vperm.xlu0 %2187, %v707_v39  }
 0x114   : > { %728 = vperm.xlu1 %2188, %v710_v40  }
 0x115   : > { %723 = vperm.xlu0 %2187, %v709_v41  }
 0x16a   : > { %v2191_v42 = vpop.permute.xlu1 %2190 }
 0x16b   : > { %v2193_v43 = vunpack.i.h.bf16 %v2191_v42  ;;  %v2192_v44 = vunpack.i.l.bf16 %v2191_v42  ;;  %v2196_v45 = vpop.permute.xlu0 %2195 }
 0x16c   : > { %v2198_v46 = vunpack.i.h.bf16 %v2196_v45  ;;  %v2197_v47 = vunpack.i.l.bf16 %v2196_v45  ;;  %v706_v45 = vld [vmem:[%s2863_s5 + $0x18] sm:$0xff] }
 0x16d   : > { %v505_v48 = vsel %vm503_vm2, %v2192_v44, %v2193_v43  ;;  %v704_v43 = vld [vmem:[%s2863_s5 + $0x8] sm:$0xff]  ;;  %v705_v44 = vld [vmem:[%s2863_s5 + $0x10] sm:$0xff] }
 0x16e   : > { %v2206_v49 = vpop.permute.xlu1 %2205  ;;  %v504_v50 = vsel %vm503_vm2, %v2197_v47, %v2198_v46 }
 0x16f   : > { %v2208_v51 = vunpack.i.h.bf16 %v2206_v49  ;;  %v2207_v52 = vunpack.i.l.bf16 %v2206_v49  ;;  %v2201_v53 = vpop.permute.xlu0 %2200  ;;  %v2036_v54 = vpack.c.bf16 %v505_v48, %v504_v50 }
 0x170   : > { %v2203_v55 = vunpack.i.h.bf16 %v2201_v53  ;;  %v2202_v56 = vunpack.i.l.bf16 %v2201_v53 }
 0x171   : > { %2037 = vmatprep.subr.bf16.mxu1 %v2036_v54  ;;  %v507_v57 = vsel %vm503_vm2, %v2207_v52, %v2208_v51 }
 0x172   : > { %v2216_v58 = vpop.permute.xlu1 %2215  ;;  %2039 = vmatpush3.bf16.msra.mxu1 %v2036_v54  ;;  %v506_v59 = vsel %vm503_vm2, %v2202_v56, %v2203_v55 }
 0x173   : > { %v2211_v60 = vpop.permute.xlu0 %2210  ;;  %v2040_v61 = vpack.c.bf16 %v507_v57, %v506_v59  ;;  %v2218_v63 = vunpack.i.h.bf16 %v2216_v58  ;;  %v2217_v0 = vunpack.i.l.bf16 %v2216_v58 }
 0x174   : > { %v2213_v1 = vunpack.i.h.bf16 %v2211_v60  ;;  %v2212_v2 = vunpack.i.l.bf16 %v2211_v60 }
 0x175   : > { %2041 = vmatprep.subr.bf16.mxu1 %v2040_v61  ;;  %v550_v7 = vsel %vm548_vm3, %v2217_v0, %v2218_v63 }
 0x176   : > { %2043 = vmatpush3.bf16.msra.mxu1 %v2040_v61  ;;  %v2226_v3 = vpop.permute.xlu1 %2225  ;;  %v549_v6 = vsel %vm548_vm3, %v2212_v2, %v2213_v1  ;;  %v1747_v2 = vld [vmem:[%s2862_s4 + $0x28] sm:$0xff] }
 0x177   : > { %v2221_v4 = vpop.permute.xlu0 %2220  ;;  %2045 = vmatprep.subr.bf16.mxu1 %v2044_v62  ;;  %v2228_v8 = vunpack.i.h.bf16 %v2226_v3  ;;  %v2227_v9 = vunpack.i.l.bf16 %v2226_v3  ;;  %v2052_v12 = vpack.c.bf16 %v550_v7, %v549_v6  ;;  %v1746_v3 = vld [vmem:[%s2862_s4 + $0x20] sm:$0xff]  ;;  %v1748_v6 = vld [vmem:[%s2862_s4 + $0x30] sm:$0xff]  ;;  %v1759_v7 = vld [vmem:[%s2864_s6 + $0x28] sm:$0xff] }
 0x178   : > { %v2223_v10 = vunpack.i.h.bf16 %v2221_v4  ;;  %v2222_v11 = vunpack.i.l.bf16 %v2221_v4  ;;  %v1742_v4 = vld [vmem:[%s2861_s3 + $0x20] sm:$0xff] }
 0x179   : > { %v552_v14 = vsel %vm548_vm3, %v2227_v9, %v2228_v8  ;;  %v1758_v8 = vld [vmem:[%s2864_s6 + $0x20] sm:$0xff]  ;;  %v1761_v9 = vld [vmem:[%s2864_s6 + $0x38] sm:$0xff] }
 0x17a   : > { %2047 = vmatpush3.bf16.msra.mxu1 %v2044_v62  ;;  %v551_v13 = vsel %vm548_vm3, %v2222_v11, %v2223_v10  ;;  %v1760_v10 = vld [vmem:[%s2864_s6 + $0x30] sm:$0xff] }
 0x17b   : > { %2049 = vmatprep.subr.bf16.mxu1 %v2048_v5  ;;  %v2056_v15 = vpack.c.bf16 %v552_v14, %v551_v13 }
 0x17e   : > { %2051 = vmatpush3.bf16.msra.mxu1 %v2048_v5  ;;  %v1749_v5 = vld [vmem:[%s2862_s4 + $0x38] sm:$0xff] }
 0x17f   : > { %2053 = vmatprep.subr.bf16.mxu1 %v2052_v12 }
 0x182   : > { %2055 = vmatpush3.bf16.msra.mxu1 %v2052_v12 }
 0x183   : > { %2057 = vmatprep.subr.bf16.mxu1 %v2056_v15 }
 0x186   : > { %2059 = vmatpush3.bf16.msra.mxu1 %v2056_v15 }
 0x187   : > { %v589_v23 = vpop.permute.xlu1 %588 }
 0x188   : > { %v584_v25 = vpop.permute.xlu0 %583 }
 0x189   : > { %1914 = vmatmul.mubr.msk.f32.vlgmr.msra.gmra.mrb[0].mxu1 %vm601_vm1, %v574_v17 }
 0x18a   : > { %1916 = vmatprep.mubr.msk.f32.mxu1 %vm601_vm1, %v575_v20 }
 0x18b   : > { %v599_v32 = vpop.permute.xlu1 %598 }
 0x18c   : > { %v594_v35 = vpop.permute.xlu0 %593 }
 0x18d   : > { %1917 = vmatmul.mubr.msk.f32.gmra.mrb[2].mxu1 %vm601_vm1, %v576_v21 }
 0x18f   : > { %v719_v46 = vpop.permute.xlu1 %718 }
 0x190   : > { %v714_v47 = vpop.permute.xlu0 %713 }
 0x193   : > { %v729_v53 = vpop.permute.xlu1 %728 }
 0x194   : > { %v724_v56 = vpop.permute.xlu0 %723 }
 0x25c   : > { %v1915_v27 = vpop.f32.mrb[0].mxu1 }
 0x25d   : > { %v686_v28 = vadd.f32 %v1915_v27, %v589_v23  ;;  %v680_v29 = vpop.f32.mrb[1].mxu1 }
 0x25e   : > { %v681_v30 = vadd.f32 %v680_v29, %v584_v25 }
 0x25f   : > { %v700_v31 = vmax.f32 %v686_v28, 0.0 }
 0x260   : > { %v699_v33 = vmax.f32 %v681_v30, 0.0  ;;  %v1918_v34 = vpop.f32.mrb[2].mxu1 }
 0x261   : > { %v696_v36 = vadd.f32 %v1918_v34, %v599_v32  ;;  %v690_v37 = vpop.f32.mrb[3].mxu1 }
 0x262   : > { %v2060_v38 = vpack.c.bf16 %v700_v31, %v699_v33  ;;  %v691_v39 = vadd.f32 %v690_v37, %v594_v35 }
 0x263   : > { %v702_v40 = vmax.f32 %v696_v36, 0.0 }
 0x264   : > { %v701_v41 = vmax.f32 %v691_v39, 0.0  ;;  %2061 = vmatprep.subr.bf16.mxu0 %v2060_v38 }
 0x265   : > { %2063 = vmatpush3.bf16.msra.mxu0 %v2060_v38 }
 0x266   : > { %v2064_v42 = vpack.c.bf16 %v702_v40, %v701_v41 }
 0x268   : > { %2065 = vmatprep.subr.bf16.mxu0 %v2064_v42 }
 0x269   : > { %2067 = vmatpush3.bf16.msra.mxu0 %v2064_v42 }
 0x26c   : > { %1928 = vmatmul.mubr.msk.f32.vlgmr.msra.gmra.mrb[4].mxu0 %vm731_vm4, %v704_v43 }
 0x26d   : > { %1930 = vmatprep.mubr.msk.f32.mxu0 %vm731_vm4, %v705_v44 }
 0x270   : > { %1931 = vmatmul.mubr.msk.f32.gmra.mrb[6].mxu0 %vm731_vm4, %v706_v45 }
 0x271   : > { %1957 = vmatprep.mubr.msk.f32.mxu0 %vm601_vm1, %v1742_v4 }
 0x33f   : > { %v1929_v48 = vpop.f32.mrb[4].mxu0 }
 0x340   : > { %v816_v49 = vadd.f32 %v1929_v48, %v719_v46  ;;  %v810_v50 = vpop.f32.mrb[5].mxu0 }
 0x341   : > { %v811_v51 = vadd.f32 %v810_v50, %v714_v47 }
 0x342   : > { %v2608_v52 = vadd.f32 %v816_v49, %v2515_v16 }
 0x343   : > { %v2611_v54 = vadd.f32 %v811_v51, %v2517_v18  ;;  %v1932_v55 = vpop.f32.mrb[6].mxu0 }
 0x344   : > { %v826_v57 = vadd.f32 %v1932_v55, %v729_v53  ;;  %v820_v58 = vpop.f32.mrb[7].mxu0  ;;  %v2229_v59 = vpack.i.bf16 %v2608_v52, %v2374_v19  ;;  %v2254_v0 = vpack.i.bf16 %v2374_v19, %v2608_v52 }
 0x345   : > { %v821_v60 = vadd.f32 %v820_v58, %v724_v56  ;;  %v2234_v61 = vpack.i.bf16 %v2611_v54, %v2374_v19  ;;  %v2076_v36 = vpack.c.bf16 %v2608_v52, %v2611_v54  ;;  %v1743_v56 = vld [vmem:[%s2861_s3 + $0x28] sm:$0xff]  ;;  %v1745_v58 = vld [vmem:[%s2861_s3 + $0x38] sm:$0xff] }
 0x346   : > { %v2618_v62 = vadd.f32 %v826_v57, %v2523_v24  ;;  %2230 = vrot.lane.b32.xlu1 %v2229_v59, %s2377_s28  ;;  %v2249_v24 = vpack.i.bf16 %v2374_v19, %v2611_v54  ;;  %v1744_v57 = vld [vmem:[%s2861_s3 + $0x30] sm:$0xff]  ;;  %v1754_v59 = vld [vmem:[%s2863_s5 + $0x20] sm:$0xff] }
 0x347   : > { %v2621_v16 = vadd.f32 %v821_v60, %v2525_v26  ;;  %2235 = vrot.lane.b32.xlu0 %v2234_v61, %s2377_s28  ;;  %1971 = vmatprep.mubr.msk.f32.mxu1 %vm731_vm4, %v1754_v59 }
 0x348   : > { %v2244_v18 = vpack.i.bf16 %v2618_v62, %v2374_v19  ;;  %v2264_v26 = vpack.i.bf16 %v2374_v19, %v2618_v62 }
 0x349   : > { %v2239_v63 = vpack.i.bf16 %v2621_v16, %v2374_v19  ;;  %v2259_v1 = vpack.i.bf16 %v2374_v19, %v2621_v16  ;;  %v2080_v43 = vpack.c.bf16 %v2618_v62, %v2621_v16 }
 0x34a   : > { %2245 = vrot.lane.b32.xlu1 %v2244_v18, %s2377_s28 }
 0x34b   : > { %2240 = vrot.lane.b32.xlu0 %v2239_v63, %s2377_s28  ;;  %s323_s28 = sand.u32 1, %s2363_s10  }
 0x34c   : > { %s1651_s24 = scalar_lea.sflag [#allocation4], %s323_s28 }
 0x34e   : > { %2255 = vrot.lane.b32.xlu1 %v2254_v0, %s2378_s29 }
 0x34f   : > { %2250 = vrot.lane.b32.xlu0 %v2249_v24, %s2378_s29 }
 0x352   : > { %2265 = vrot.lane.b32.xlu1 %v2264_v26, %s2378_s29 }
 0x353   : > { %2260 = vrot.lane.b32.xlu0 %v2259_v1, %s2378_s29  ;;  %s1727_s29 = sshll.u32 %s323_s28, 3 }
 0x354   : > { %s325_s16 = scalar_lea.vmem [#allocation3], %s1727_s29 }
 0x355   : > { %s1664_s17 = sshll.u32 %s325_s16, 4  ;;  %s2818_s17 = int_to_ptr.vmem [resolvable:$true] %s1664_s17 }
 0x356   : > { %956 = vperm.xlu1 %2188, %v1747_v2   ;;  %s2309_s25 = scalar_lea.vmem %s2818_s17, 128 }
 0x357   : > { %951 = vperm.xlu0 %2187, %v1746_v3   ;;  %p2310_p11 = scmp.ne.s32.totalorder %s2818_s17, %s2309_s25 }
 0x359   : > { %p2311_p12 = pnand %p2310_p11, %p2472_p5 }
 0x35a   : > { %966 = vperm.xlu1 %2188, %v1749_v5  }
 0x35b   : > { %961 = vperm.xlu0 %2187, %v1748_v6   ;;  %p2312_p13 = pneg %p2311_p12 }
 0x35e   : > { %1087 = vperm.xlu1 %2188, %v1759_v7  }
 0x35f   : > { %1082 = vperm.xlu0 %2187, %v1758_v8  }
 0x362   : > { %1097 = vperm.xlu1 %2188, %v1761_v9  }
 0x363   : > { %1092 = vperm.xlu0 %2187, %v1760_v10  }
 0x3b8   : > { %v2231_v11 = vpop.permute.xlu1 %2230 }
 0x3b9   : > { %v2233_v12 = vunpack.i.h.bf16 %v2231_v11  ;;  %v2232_v13 = vunpack.i.l.bf16 %v2231_v11  ;;  %v2236_v14 = vpop.permute.xlu0 %2235 }
 0x3ba   : > { %v2238_v15 = vunpack.i.h.bf16 %v2236_v14  ;;  %v2237_v17 = vunpack.i.l.bf16 %v2236_v14  ;;  %v1757_v14 = vld [vmem:[%s2863_s5 + $0x38] sm:$0xff] }
 0x3bb   : > { %v871_v20 = vsel %vm869_vm5, %v2232_v13, %v2233_v12  ;;  %v1755_v12 = vld [vmem:[%s2863_s5 + $0x28] sm:$0xff]  ;;  %v1756_v13 = vld [vmem:[%s2863_s5 + $0x30] sm:$0xff] }
 0x3bc   : > { %v2246_v21 = vpop.permute.xlu1 %2245  ;;  %v870_v22 = vsel %vm869_vm5, %v2237_v17, %v2238_v15 }
 0x3bd   : > { %v2248_v23 = vunpack.i.h.bf16 %v2246_v21  ;;  %v2247_v25 = vunpack.i.l.bf16 %v2246_v21  ;;  %v2241_v27 = vpop.permute.xlu0 %2240  ;;  %v2068_v28 = vpack.c.bf16 %v871_v20, %v870_v22 }
 0x3be   : > { %v2243_v29 = vunpack.i.h.bf16 %v2241_v27  ;;  %v2242_v30 = vunpack.i.l.bf16 %v2241_v27 }
 0x3bf   : > { %2069 = vmatprep.subr.bf16.mxu0 %v2068_v28  ;;  %v873_v31 = vsel %vm869_vm5, %v2247_v25, %v2248_v23 }
 0x3c0   : > { %v2256_v32 = vpop.permute.xlu1 %2255  ;;  %2071 = vmatpush3.bf16.msra.mxu0 %v2068_v28  ;;  %v872_v33 = vsel %vm869_vm5, %v2242_v30, %v2243_v29 }
 0x3c1   : > { %v2251_v34 = vpop.permute.xlu0 %2250  ;;  %v2072_v35 = vpack.c.bf16 %v873_v31, %v872_v33  ;;  %v2258_v37 = vunpack.i.h.bf16 %v2256_v32  ;;  %v2257_v38 = vunpack.i.l.bf16 %v2256_v32 }
 0x3c2   : > { %v2253_v39 = vunpack.i.h.bf16 %v2251_v34  ;;  %v2252_v40 = vunpack.i.l.bf16 %v2251_v34 }
 0x3c3   : > { %2073 = vmatprep.subr.bf16.mxu0 %v2072_v35  ;;  %v916_v45 = vsel %vm914_vm6, %v2257_v38, %v2258_v37 }
 0x3c4   : > { %2075 = vmatpush3.bf16.msra.mxu0 %v2072_v35  ;;  %v2266_v41 = vpop.permute.xlu1 %2265  ;;  %v915_v44 = vsel %vm914_vm6, %v2252_v40, %v2253_v39  ;;  %v1771_v40 = vld [vmem:[%s2862_s4 + $0x48] sm:$0xff] }
 0x3c5   : > { %v2261_v42 = vpop.permute.xlu0 %2260  ;;  %2077 = vmatprep.subr.bf16.mxu0 %v2076_v36  ;;  %v2268_v46 = vunpack.i.h.bf16 %v2266_v41  ;;  %v2267_v47 = vunpack.i.l.bf16 %v2266_v41  ;;  %v2084_v50 = vpack.c.bf16 %v916_v45, %v915_v44  ;;  %v1770_v41 = vld [vmem:[%s2862_s4 + $0x40] sm:$0xff]  ;;  %v1772_v44 = vld [vmem:[%s2862_s4 + $0x50] sm:$0xff]  ;;  %v1783_v45 = vld [vmem:[%s2864_s6 + $0x48] sm:$0xff] }
 0x3c6   : > { %v2263_v48 = vunpack.i.h.bf16 %v2261_v42  ;;  %v2262_v49 = vunpack.i.l.bf16 %v2261_v42  ;;  %v1766_v42 = vld [vmem:[%s2861_s3 + $0x40] sm:$0xff] }
 0x3c7   : > { %v918_v53 = vsel %vm914_vm6, %v2267_v47, %v2268_v46  ;;  %v1782_v46 = vld [vmem:[%s2864_s6 + $0x40] sm:$0xff]  ;;  %v1785_v47 = vld [vmem:[%s2864_s6 + $0x58] sm:$0xff] }
 0x3c8   : > { %2079 = vmatpush3.bf16.msra.mxu0 %v2076_v36  ;;  %v917_v51 = vsel %vm914_vm6, %v2262_v49, %v2263_v48  ;;  %v1784_v48 = vld [vmem:[%s2864_s6 + $0x50] sm:$0xff]  ;;  %v1570_v49 = vld [vmem:[%s2866_s8] sm:$0xff] }
 0x3c9   : > { %2081 = vmatprep.subr.bf16.mxu0 %v2080_v43  ;;  %v2088_v55 = vpack.c.bf16 %v918_v53, %v917_v51 }
 0x3cc   : > { %2083 = vmatpush3.bf16.msra.mxu0 %v2080_v43  ;;  %v1773_v43 = vld [vmem:[%s2862_s4 + $0x58] sm:$0xff] }
 0x3cd   : > { %2085 = vmatprep.subr.bf16.mxu0 %v2084_v50 }
 0x3d0   : > { %2087 = vmatpush3.bf16.msra.mxu0 %v2084_v50 }
 0x3d1   : > { %2089 = vmatprep.subr.bf16.mxu0 %v2088_v55 }
 0x3d4   : > { %2091 = vmatpush3.bf16.msra.mxu0 %v2088_v55 }
 0x3d5   : > { %v957_v60 = vpop.permute.xlu1 %956 }
 0x3d6   : > { %v952_v61 = vpop.permute.xlu0 %951 }
 0x3d7   : > { %1958 = vmatmul.mubr.msk.f32.vlgmr.msra.gmra.mrb[8].mxu0 %vm601_vm1, %v1743_v56 }
 0x3d8   : > { %1960 = vmatprep.mubr.msk.f32.mxu0 %vm601_vm1, %v1744_v57 }
 0x3d9   : > { %v967_v1 = vpop.permute.xlu1 %966 }
 0x3da   : > { %v962_v4 = vpop.permute.xlu0 %961 }
 0x3db   : > { %1961 = vmatmul.mubr.msk.f32.gmra.mrb[10].mxu0 %vm601_vm1, %v1745_v58 }
 0x3dd   : > { %v1088_v15 = vpop.permute.xlu1 %1087 }
 0x3de   : > { %v1083_v17 = vpop.permute.xlu0 %1082 }
 0x3e1   : > { %v1098_v27 = vpop.permute.xlu1 %1097 }
 0x3e2   : > { %v1093_v30 = vpop.permute.xlu0 %1092 }
 0x4aa   : > { %v1959_v18 = vpop.f32.mrb[8].mxu0 }
 0x4ab   : > { %v1053_v63 = vadd.f32 %v1959_v18, %v957_v60  ;;  %v1047_v0 = vpop.f32.mrb[9].mxu0 }
 0x4ac   : > { %v1048_v24 = vadd.f32 %v1047_v0, %v952_v61 }
 0x4ad   : > { %v1067_v26 = vmax.f32 %v1053_v63, 0.0 }
 0x4ae   : > { %v1066_v2 = vmax.f32 %v1048_v24, 0.0  ;;  %v1962_v3 = vpop.f32.mrb[10].mxu0 }
 0x4af   : > { %v1063_v5 = vadd.f32 %v1962_v3, %v967_v1  ;;  %v1057_v6 = vpop.f32.mrb[11].mxu0 }
 0x4b0   : > { %v2092_v7 = vpack.c.bf16 %v1067_v26, %v1066_v2  ;;  %v1058_v8 = vadd.f32 %v1057_v6, %v962_v4 }
 0x4b1   : > { %v1069_v9 = vmax.f32 %v1063_v5, 0.0 }
 0x4b2   : > { %v1068_v10 = vmax.f32 %v1058_v8, 0.0  ;;  %2093 = vmatprep.subr.bf16.mxu1 %v2092_v7 }
 0x4b3   : > { %2095 = vmatpush3.bf16.msra.mxu1 %v2092_v7 }
 0x4b4   : > { %v2096_v11 = vpack.c.bf16 %v1069_v9, %v1068_v10 }
 0x4b6   : > { %2097 = vmatprep.subr.bf16.mxu1 %v2096_v11 }
 0x4b7   : > { %2099 = vmatpush3.bf16.msra.mxu1 %v2096_v11 }
 0x4ba   : > { %1972 = vmatmul.mubr.msk.f32.vlgmr.msra.gmra.mrb[4].mxu1 %vm731_vm4, %v1755_v12 }
 0x4bb   : > { %1974 = vmatprep.mubr.msk.f32.mxu1 %vm731_vm4, %v1756_v13 }
 0x4be   : > { %1975 = vmatmul.mubr.msk.f32.gmra.mrb[6].mxu1 %vm731_vm4, %v1757_v14 }
 0x4bf   : > { %2001 = vmatprep.mubr.msk.f32.mxu1 %vm601_vm1, %v1766_v42 }
 0x58d   : > { %v1973_v20 = vpop.f32.mrb[4].mxu1 }
 0x58e   : > { %v1184_v21 = vadd.f32 %v1973_v20, %v1088_v15  ;;  %v1178_v22 = vpop.f32.mrb[5].mxu1 }
 0x58f   : > { %v1179_v23 = vadd.f32 %v1178_v22, %v1083_v17 }
 0x590   : > { %v2704_v25 = vadd.f32 %v1184_v21, %v2608_v52 }
 0x591   : > { %v2707_v28 = vadd.f32 %v1179_v23, %v2611_v54  ;;  %v1976_v29 = vpop.f32.mrb[6].mxu1 }
 0x592   : > { %v1194_v31 = vadd.f32 %v1976_v29, %v1098_v27  ;;  %v1188_v32 = vpop.f32.mrb[7].mxu1  ;;  %v2269_v33 = vpack.i.bf16 %v2704_v25, %v2374_v19  ;;  %v2294_v38 = vpack.i.bf16 %v2374_v19, %v2704_v25 }
 0x593   : > { %v1189_v34 = vadd.f32 %v1188_v32, %v1093_v30  ;;  %v2274_v35 = vpack.i.bf16 %v2707_v28, %v2374_v19  ;;  %v2108_v6 = vpack.c.bf16 %v2704_v25, %v2707_v28  ;;  %v1768_v32 = vld [vmem:[%s2861_s3 + $0x50] sm:$0xff] }
 0x594   : > { %v2714_v36 = vadd.f32 %v1194_v31, %v2618_v62  ;;  %2270 = vrot.lane.b32.xlu1 %v2269_v33, %s2379_s26  ;;  %v2289_v62 = vpack.i.bf16 %v2374_v19, %v2707_v28  ;;  %v1767_v31 = vld [vmem:[%s2861_s3 + $0x48] sm:$0xff]  ;;  %v1769_v33 = vld [vmem:[%s2861_s3 + $0x58] sm:$0xff] }
 0x595   : > { %v2717_v52 = vadd.f32 %v1189_v34, %v2621_v16  ;;  %2275 = vrot.lane.b32.xlu0 %v2274_v35, %s2379_s26  ;;  %v1778_v34 = vld [vmem:[%s2863_s5 + $0x40] sm:$0xff] }
 0x596   : > { %v2284_v54 = vpack.i.bf16 %v2714_v36, %v2374_v19  ;;  %v2304_v16 = vpack.i.bf16 %v2374_v19, %v2714_v36  ;;  %2015 = vmatprep.mubr.msk.f32.mxu0 %vm731_vm4, %v1778_v34 }
 0x597   : > { %v2279_v37 = vpack.i.bf16 %v2717_v52, %v2374_v19  ;;  %v2299_v39 = vpack.i.bf16 %v2374_v19, %v2717_v52  ;;  %v2112_v13 = vpack.c.bf16 %v2714_v36, %v2717_v52 }
 0x598   : > { %2285 = vrot.lane.b32.xlu1 %v2284_v54, %s2379_s26 }
 0x599   : > { %2280 = vrot.lane.b32.xlu0 %v2279_v37, %s2379_s26  ;;  %s2313_s26 = sshll.u32 %s2383_s13, 4  ;;  %s2314_s26 = int_to_ptr.vmem [resolvable:$false] %s2313_s26 }
 0x59a   : > { %p2316_p0 = scmp.lt.s32.totalorder %s2818_s17, %s2314_s26 }
 0x59c   : > { %2295 = vrot.lane.b32.xlu1 %v2294_v38, %s2380_s27 }
 0x59d   : > { %2290 = vrot.lane.b32.xlu0 %v2289_v62, %s2380_s27 }
 0x5a0   : > { %2305 = vrot.lane.b32.xlu1 %v2304_v16, %s2380_s27 }
 0x5a1   : > { %2300 = vrot.lane.b32.xlu0 %v2299_v39, %s2380_s27  ;;  %s2315_s27 = scalar_lea.vmem %s2314_s26, 256 }
 0x5a2   : > { %p2317_p1 = scmp.lt.s32.totalorder %s2315_s27, %s2309_s25 }
 0x5a4   : > { %1324 = vperm.xlu1 %2188, %v1771_v40   ;;  %p2318_p2 = por %p2317_p1, %p2316_p0 }
 0x5a5   : > { %1319 = vperm.xlu0 %2187, %v1770_v41  }
 0x5a6   : > { %p2319_p3 = pnand %p2318_p2, %p2312_p13 }
 0x5a8   : > { %1334 = vperm.xlu1 %2188, %v1773_v43  }
 0x5a9   : > { %1329 = vperm.xlu0 %2187, %v1772_v44  }
 0x5ac   : > { %1455 = vperm.xlu1 %2188, %v1783_v45  }
 0x5ad   : > { %1450 = vperm.xlu0 %2187, %v1782_v46  }
 0x5b0   : > { %1465 = vperm.xlu1 %2188, %v1785_v47  }
 0x5b1   : > { %1460 = vperm.xlu0 %2187, %v1784_v48  }
 0x5b5   : > { %1573 = vperm.xlu0 %2187, %v1570_v49  }
 0x606   : > { %v2271_v50 = vpop.permute.xlu1 %2270 }
 0x607   : > { %v2273_v51 = vunpack.i.h.bf16 %v2271_v50  ;;  %v2272_v53 = vunpack.i.l.bf16 %v2271_v50  ;;  %v2276_v55 = vpop.permute.xlu0 %2275 }
 0x608   : > { %v2278_v56 = vunpack.i.h.bf16 %v2276_v55  ;;  %v2277_v57 = vunpack.i.l.bf16 %v2276_v55  ;;  %v1781_v55 = vld [vmem:[%s2863_s5 + $0x58] sm:$0xff] }
 0x609   : > { %v1239_v58 = vsel %vm1237_vm7, %v2272_v53, %v2273_v51  ;;  %v1779_v51 = vld [vmem:[%s2863_s5 + $0x48] sm:$0xff]  ;;  %v1780_v53 = vld [vmem:[%s2863_s5 + $0x50] sm:$0xff] }
 0x60a   : > { %v2286_v59 = vpop.permute.xlu1 %2285  ;;  %v1238_v60 = vsel %vm1237_vm7, %v2277_v57, %v2278_v56  ;;  %v2381_v56 = vmov 0.0|0.0  }
 0x60b   : > { %v2288_v61 = vunpack.i.h.bf16 %v2286_v59  ;;  %v2287_v18 = vunpack.i.l.bf16 %v2286_v59  ;;  %v2281_v63 = vpop.permute.xlu0 %2280  ;;  %v2100_v0 = vpack.c.bf16 %v1239_v58, %v1238_v60 }
 0x60c   : > { %v2283_v24 = vunpack.i.h.bf16 %v2281_v63  ;;  %v2282_v26 = vunpack.i.l.bf16 %v2281_v63 }
 0x60d   : > { %2101 = vmatprep.subr.bf16.mxu1 %v2100_v0  ;;  %v1241_v1 = vsel %vm1237_vm7, %v2287_v18, %v2288_v61 }
 0x60e   : > { %v2296_v2 = vpop.permute.xlu1 %2295  ;;  %2103 = vmatpush3.bf16.msra.mxu1 %v2100_v0  ;;  %v1240_v3 = vsel %vm1237_vm7, %v2282_v26, %v2283_v24 }
 0x60f   : > { %v2291_v4 = vpop.permute.xlu0 %2290  ;;  %v2104_v5 = vpack.c.bf16 %v1241_v1, %v1240_v3  ;;  %v2298_v7 = vunpack.i.h.bf16 %v2296_v2  ;;  %v2297_v8 = vunpack.i.l.bf16 %v2296_v2 }
 0x610   : > { %v2293_v9 = vunpack.i.h.bf16 %v2291_v4  ;;  %v2292_v10 = vunpack.i.l.bf16 %v2291_v4 }
 0x611   : > { %2105 = vmatprep.subr.bf16.mxu1 %v2104_v5  ;;  %v1284_v15 = vsel %vm1282_vm8, %v2297_v8, %v2298_v7 }
 0x612   : > { %2107 = vmatpush3.bf16.msra.mxu1 %v2104_v5  ;;  %v2306_v11 = vpop.permute.xlu1 %2305  ;;  %v1283_v14 = vsel %vm1282_vm8, %v2292_v10, %v2293_v9 }
 0x613   : > { %v2301_v12 = vpop.permute.xlu0 %2300  ;;  %2109 = vmatprep.subr.bf16.mxu1 %v2108_v6  ;;  %v2308_v17 = vunpack.i.h.bf16 %v2306_v11  ;;  %v2307_v20 = vunpack.i.l.bf16 %v2306_v11  ;;  %v2116_v23 = vpack.c.bf16 %v1284_v15, %v1283_v14 }
 0x614   : > { %v2303_v21 = vunpack.i.h.bf16 %v2301_v12  ;;  %v2302_v22 = vunpack.i.l.bf16 %v2301_v12 }
 0x615   : > { %v1286_v29 = vsel %vm1282_vm8, %v2307_v20, %v2308_v17 }
 0x616   : > { %2111 = vmatpush3.bf16.msra.mxu1 %v2108_v6  ;;  %v1285_v27 = vsel %vm1282_vm8, %v2302_v22, %v2303_v21 }
 0x617   : > { %2113 = vmatprep.subr.bf16.mxu1 %v2112_v13  ;;  %v2120_v30 = vpack.c.bf16 %v1286_v29, %v1285_v27 }
 0x61a   : > { %2115 = vmatpush3.bf16.msra.mxu1 %v2112_v13 }
 0x61b   : > { %2117 = vmatprep.subr.bf16.mxu1 %v2116_v23 }
 0x61e   : > { %2119 = vmatpush3.bf16.msra.mxu1 %v2116_v23 }
 0x61f   : > { %2121 = vmatprep.subr.bf16.mxu1 %v2120_v30 }
 0x622   : > { %2123 = vmatpush3.bf16.msra.mxu1 %v2120_v30 }
 0x623   : > { %v1325_v35 = vpop.permute.xlu1 %1324 }
 0x624   : > { %v1320_v54 = vpop.permute.xlu0 %1319 }
 0x625   : > { %2002 = vmatmul.mubr.msk.f32.vlgmr.msra.gmra.mrb[8].mxu1 %vm601_vm1, %v1767_v31 }
 0x626   : > { %2004 = vmatprep.mubr.msk.f32.mxu1 %vm601_vm1, %v1768_v32 }
 0x627   : > { %v1335_v40 = vpop.permute.xlu1 %1334 }
 0x628   : > { %v1330_v43 = vpop.permute.xlu0 %1329 }
 0x629   : > { %2005 = vmatmul.mubr.msk.f32.gmra.mrb[10].mxu1 %vm601_vm1, %v1769_v33 }
 0x62b   : > { %v1456_v57 = vpop.permute.xlu1 %1455 }
 0x62c   : > { %v1451_v58 = vpop.permute.xlu0 %1450 }
 0x62f   : > { %v1466_v0 = vpop.permute.xlu1 %1465 }
 0x630   : > { %v1461_v1 = vpop.permute.xlu0 %1460 }
 0x6f8   : > { %v2003_v37 = vpop.f32.mrb[8].mxu1 }
 0x6f9   : > { %v1421_v38 = vadd.f32 %v2003_v37, %v1325_v35  ;;  %v1415_v62 = vpop.f32.mrb[9].mxu1 }
 0x6fa   : > { %v1416_v16 = vadd.f32 %v1415_v62, %v1320_v54 }
 0x6fb   : > { %v1435_v39 = vmax.f32 %v1421_v38, 0.0 }
 0x6fc   : > { %v1434_v41 = vmax.f32 %v1416_v16, 0.0  ;;  %v2006_v42 = vpop.f32.mrb[10].mxu1 }
 0x6fd   : > { %v1431_v44 = vadd.f32 %v2006_v42, %v1335_v40  ;;  %v1425_v45 = vpop.f32.mrb[11].mxu1 }
 0x6fe   : > { %v2124_v46 = vpack.c.bf16 %v1435_v39, %v1434_v41  ;;  %v1426_v47 = vadd.f32 %v1425_v45, %v1330_v43 }
 0x6ff   : > { %v1437_v48 = vmax.f32 %v1431_v44, 0.0 }
 0x700   : > { %v1436_v49 = vmax.f32 %v1426_v47, 0.0  ;;  %2125 = vmatprep.subr.bf16.mxu0 %v2124_v46 }
 0x701   : > { %2127 = vmatpush3.bf16.msra.mxu0 %v2124_v46 }
 0x702   : > { %v2128_v50 = vpack.c.bf16 %v1437_v48, %v1436_v49 }
 0x704   : > { %2129 = vmatprep.subr.bf16.mxu0 %v2128_v50 }
 0x705   : > { %2131 = vmatpush3.bf16.msra.mxu0 %v2128_v50 }
 0x706   : > { %2132 = vmatprep.subr.bf16.mxu0 %v2381_v56 }
 0x708   : > { %2016 = vmatmul.mubr.msk.f32.vlgmr.msra.gmra.mrb[12].mxu0 %vm731_vm4, %v1779_v51 }
 0x709   : > { %2018 = vmatprep.mubr.msk.f32.mxu0 %vm731_vm4, %v1780_v53 }
 0x70c   : > { %2019 = vmatmul.mubr.msk.f32.gmra.mrb[14].mxu0 %vm731_vm4, %v1781_v55 }
 0x70d   : > { %2029 = vmatprep.mubr.msk.f32.mxu0 %vm2382_vm9, %v2374_v19 }
 0x7db   : > { %v2017_v59 = vpop.f32.mrb[12].mxu0 }
 0x7dc   : > { %v1552_v60 = vadd.f32 %v2017_v59, %v1456_v57  ;;  %v1546_v61 = vpop.f32.mrb[13].mxu0 }
 0x7dd   : > { %v1547_v18 = vadd.f32 %v1546_v61, %v1451_v58 }
 0x7de   : > { %v1566_v63 = vadd.f32 %v1552_v60, %v2704_v25  ;;  %v1569_v25 = vld [vmem:[%s2865_s7] sm:$0xff] }
 0x7df   : > { %v1565_v24 = vadd.f32 %v1547_v18, %v2707_v28  ;;  %v2020_v26 = vpop.f32.mrb[14].mxu0  ;;  %v1574_v28 = vpop.permute.xlu0 %1573 }
 0x7e0   : > { %v1562_v2 = vadd.f32 %v2020_v26, %v1466_v0  ;;  %v1556_v3 = vpop.f32.mrb[15].mxu0 }
 0x7e1   : > { %v2133_v4 = vpack.c.bf16 %v1566_v63, %v1565_v24  ;;  %v1557_v5 = vadd.f32 %v1556_v3, %v1461_v1 }
 0x7e2   : > { %v1568_v19 = vadd.f32 %v1562_v2, %v2714_v36 }
 0x7e3   : > { %v1567_v6 = vadd.f32 %v1557_v5, %v2717_v52  ;;  %2134 = vmatpush3.bf16.msra.mxu0 %v2133_v4 }
 0x7e4   : > { %2135 = vmatprep.subr.bf16.mxu0 %v2381_v56 }
 0x7e5   : > { %v2136_v7 = vpack.c.bf16 %v1568_v19, %v1567_v6 }
 0x7e7   : > { %2137 = vmatpush3.bf16.msra.mxu0 %v2136_v7 }
 0x7ea   : > { %2030 = vmatmul.mubr.msk.f32.vlgmr.msra.gmra.mrb[16].mxu0 %vm731_vm4, %v1569_v25 }
 0x8bd   : > { %v1645_v36 = vpop.f32.mrb[16].mxu0 }
 0x8be   : > { %v1646_v8 = vadd.f32 %v1645_v36, %v1574_v28  ;;  %v2031_v52 = vpop.f32.mrb[17].mxu0 }
 0x8c0   : > { %1649 = vst [vmem:[%s325_s16] sm:$0xff] %v1646_v8 }
 0x8c1   : > { %2322 = shalt.err (!%p2319_p3)
}
 0x8c2   : > { %s2323_s28 = scalar_lea.hbm %s2816_s23, 128  ;;  %s2327_s16 = scalar_lea.hbm %s2867_s9, 256 }
 0x8c3   : > { %p2324_p4 = scmp.ne.s32.totalorder %s2816_s23, %s2323_s28  ;;  %p2328_p9 = scmp.lt.u32.totalorder %s2816_s23, %s2867_s9 }
 0x8c4   : > { %p2329_p10 = scmp.lt.u32.totalorder %s2327_s16, %s2323_s28  ;;  %p2331_p12 = scmp.lt.u32.totalorder %s2323_s28, %s2816_s23 }
 0x8c5   : > { %p2325_p7 = pnand %p2324_p4, %p2472_p5 }
 0x8c6   : > { %p2330_p11 = por %p2329_p10, %p2328_p9 }
 0x8c7   : > { %p2326_p8 = pneg %p2325_p7 }
 0x8c8   : > { %p2332_p13 = por %p2331_p12, %p2330_p11 }
 0x8ca   : > { %p2333_p0 = pnand %p2332_p13, %p2326_p8 }
 0x8cc   : > { %2336 = shalt.err (!%p2333_p0)
}
 0x8cd   : > { %2138 = dma.vmem_to_hbm [thread:$0]  (%p2472_p5), %s2818_s17, 128, %s2816_s23, %s1651_s24  }
 0x8ce PF: > { %p2144_p1 = scmp.ge.s32.totalorder %s2371_s12, 2  ;;  %s1676_s25 = sand.u32 1, %s2359_s30  }
 0x8cf   : > { %s1677_s13 = scalar_lea.sflag [#allocation4], %s1676_s25 }
 0x8d0   : > { %p2141_p2 = pnand %p2144_p1, %p2476_p6 }
 0x8d2   : > { %2354 = dma.done.wait (!%p2141_p2), %s1677_s13, 128  }
 0x8d3   : > { %2356 = vsyncadd (!%p2141_p2), %s1677_s13, 4294967168  ;;  %p19_p3 = scmp.ge.s32.totalorder %s2459_s15, 4   ;;  %s2870_s30 = smov %s2363_s10 }
 0x8d4   : > { %s2871_s10 = smov %s2367_s11  ;;  %s2872_s11 = smov %s2470_s18 }
 0x8d5   : > { %s2873_s12 = smov %s2459_s15  ;;  %21 = sbr.rel (!%p19_p3) target bundleno = 3 (0x3), region = 99 }
 0x8dc   :  { %1682 = vsyncpa [#allocation4], 1 }
 0x8dd   :  { %1684 = vsyncpa [#allocation4 + $0x1], 1 }

</bundles_post_ra>
